<compile_context>
chip_gen: v7x
topology: tpu7x:2x2x1
jax: 0.10.0
libtpu: 0.0.40
codegen_flags: <defaults>
</compile_context>

<pallas_src>
import jax
import jax.numpy as jnp
from jax.experimental import pallas as pl
from jax.experimental.pallas import tpu as pltpu


def _policy_select_kernel(state_ref, bert_ref, ws_ref, wb_ref, b_ref, hist_ref,
                          probs_ref, action_ref):
    """Fused (concat + Linear) -> softmax -> history mask -> argmax, all in VMEM."""
    # Weights stay lane-dense (A, D_in); contract on the feature (last) dim of
    # both operands. logits = state @ Ws.T + after_bert @ Wb.T + b, which is
    # exactly concat([state, after_bert]) @ W.T + b with the concat fused away.
    dn = (((1,), (1,)), ((), ()))
    logits = (jax.lax.dot_general(state_ref[...], ws_ref[...], dn,
                                  preferred_element_type=jnp.float32)
              + jax.lax.dot_general(bert_ref[...], wb_ref[...], dn,
                                    preferred_element_type=jnp.float32)
              + b_ref[...])

    # softmax over the action axis (dim=1 in the PyTorch code).
    m = jnp.max(logits, axis=-1, keepdims=True)
    e = jnp.exp(logits - m)
    denom = jnp.sum(e, axis=-1, keepdims=True)
    # approx=True -> EUP vrcp (otherwise idle); well within 1e-3 tolerance.
    probs = e * pl.reciprocal(denom, approx=True)

    # multiply by history_action mask (already-taken actions are zeroed out).
    masked = probs * hist_ref[...]
    probs_ref[...] = masked

    # argmax over the action axis; first occurrence of the max (like torch.max).
    # Comparison is on the f32 masked values, so ties break identically to torch.
    a_dim = masked.shape[-1]
    idx = jax.lax.broadcasted_iota(jnp.int32, masked.shape, dimension=1)
    max_val = jnp.max(masked, axis=-1, keepdims=True)
    candidate = jnp.where(masked == max_val, idx, jnp.int32(a_dim))
    action_ref[...] = jnp.min(candidate, axis=-1, keepdims=True).astype(jnp.int32)


def zm_dqn_select_action(state, after_bert, history_mask, weight, bias):
    """Pallas wrapper for ZMDqn.select_action greedy path.

    state:        (B, n_actions)              f32  (n_states == n_actions)
    after_bert:   (B, 768)                    f32
    history_mask: (B, n_actions)              f32
    weight:       (n_actions, n_actions+768)  f32  (torch nn.Linear weight layout)
    bias:         (n_actions,)                f32
    returns: (masked_probs (B, n_actions) f32, actions (B, 1) i32)
    """
    B, A = state.shape
    # Split the lane-dense weight along its input dim: first A columns act on
    # `state`, the rest on `after_bert` (mirrors torch.cat([x, after_bert])).
    w_state = weight[:, :A].astype(jnp.float32)
    w_bert = weight[:, A:].astype(jnp.float32)
    b2 = bias.reshape(1, A).astype(jnp.float32)

    vmem = pl.BlockSpec(memory_space=pltpu.MemorySpace.VMEM)
    probs, actions = pl.pallas_call(
        _policy_select_kernel,
        out_shape=(
            jax.ShapeDtypeStruct((B, A), jnp.float32),
            jax.ShapeDtypeStruct((B, 1), jnp.int32),
        ),
        in_specs=[vmem, vmem, vmem, vmem, vmem, vmem],
        out_specs=(vmem, vmem),
    )(state.astype(jnp.float32), after_bert.astype(jnp.float32),
      w_state, w_bert, b2, history_mask.astype(jnp.float32))
    return probs, actions


def _torch_linear_init(key, in_features, out_features):
    """Deterministic nn.Linear-style init: U(-1/sqrt(in), 1/sqrt(in)).

    Returns weight in torch layout (out_features, in_features)."""
    kw, kb = jax.random.split(key)
    bound = 1.0 / (in_features ** 0.5)
    w = jax.random.uniform(kw, (out_features, in_features), jnp.float32,
                           minval=-bound, maxval=bound)
    b = jax.random.uniform(kb, (out_features,), jnp.float32,
                           minval=-bound, maxval=bound)
    return w, b


# TODO(synk): BertModel encoder, LightGBM predict_net, ReplayMemory sampling,
# UserSimulator environment stepping, epsilon-greedy randomness and the Adam
# optimizer step in optimize_model have no Pallas equivalent here.

if __name__ == "__main__":
    key = jax.random.PRNGKey(0)
    k_state, k_bert, k_params = jax.random.split(key, 3)

    B = 2            # batch of episodes
    N_ACTIONS = 8    # config 'rl.n_actions' (== n_states)
    BERT_DIM = 768   # pooled BERT output dimension

    # current DQN state in {-1, 0, 1} as produced by take_action
    state = jax.random.randint(k_state, (B, N_ACTIONS), -1, 2).astype(jnp.float32)
    after_bert = jax.random.normal(k_bert, (B, BERT_DIM), jnp.float32)

    # history_action starts at ones; pretend action 0 was already taken for item 0
    history_mask = jnp.ones((B, N_ACTIONS), jnp.float32).at[0, 0].set(0.0)

    weight, bias = _torch_linear_init(k_params, N_ACTIONS + BERT_DIM, N_ACTIONS)

    run = jax.jit(zm_dqn_select_action)
    probs, actions = run(state, after_bert, history_mask, weight, bias)
    jax.block_until_ready((probs, actions))

    # sanity check against a pure-JAX reference of the same math
    y = jnp.concatenate([state, after_bert], axis=1)
    logits = y @ weight.T + bias
    ref_probs = jax.nn.softmax(logits, axis=1) * history_mask
    ref_actions = jnp.argmax(ref_probs, axis=1).reshape(B, 1).astype(jnp.int32)
    assert probs.shape == (B, N_ACTIONS) and actions.shape == (B, 1)
    assert jnp.allclose(probs, ref_probs, rtol=1e-3, atol=1e-3)
    assert jnp.array_equal(actions, ref_actions)

    print("KERNEL_OK")
</pallas_src>

<mosaic_0001>
module attributes {stable_mosaic.version = 11 : i64} {
  func.func @_policy_select_kernel(%arg0: memref<2x8xf32, #tpu.memory_space<vmem>>, %arg1: memref<2x768xf32, #tpu.memory_space<vmem>>, %arg2: memref<8x8xf32, #tpu.memory_space<vmem>>, %arg3: memref<8x768xf32, #tpu.memory_space<vmem>>, %arg4: memref<1x8xf32, #tpu.memory_space<vmem>>, %arg5: memref<2x8xf32, #tpu.memory_space<vmem>>, %arg6: memref<2x8xf32, #tpu.memory_space<vmem>>, %arg7: memref<2x1xi32, #tpu.memory_space<vmem>>) attributes {dimension_semantics = [], scalar_prefetch = 0 : i64, scratch_operands = 0 : i64, tpu.core_type = #tpu.core_type<tc>} {
    %c0 = arith.constant 0 : index
    %c0_0 = arith.constant 0 : index
    %0 = vector.load %arg0[%c0, %c0_0] : memref<2x8xf32, #tpu.memory_space<vmem>>, vector<2x8xf32>
    %c0_1 = arith.constant 0 : index
    %c0_2 = arith.constant 0 : index
    %1 = vector.load %arg2[%c0_1, %c0_2] : memref<8x8xf32, #tpu.memory_space<vmem>>, vector<8x8xf32>
    %cst = arith.constant dense<0.000000e+00> : vector<2x8xf32>
    %2 = tpu.matmul %0, %1, %cst {dimension_numbers = #tpu.dot_dimension_numbers<[1], [1], [0], [0], [0, 0, 1, 0], [], []>} : vector<2x8xf32>, vector<8x8xf32>, vector<2x8xf32> -> vector<2x8xf32>
    %c0_3 = arith.constant 0 : index
    %c0_4 = arith.constant 0 : index
    %3 = vector.load %arg1[%c0_3, %c0_4] : memref<2x768xf32, #tpu.memory_space<vmem>>, vector<2x768xf32>
    %c0_5 = arith.constant 0 : index
    %c0_6 = arith.constant 0 : index
    %4 = vector.load %arg3[%c0_5, %c0_6] : memref<8x768xf32, #tpu.memory_space<vmem>>, vector<8x768xf32>
    %cst_7 = arith.constant dense<0.000000e+00> : vector<2x8xf32>
    %5 = tpu.matmul %3, %4, %cst_7 {dimension_numbers = #tpu.dot_dimension_numbers<[1], [1], [0], [0], [0, 0, 1, 0], [], []>} : vector<2x768xf32>, vector<8x768xf32>, vector<2x8xf32> -> vector<2x8xf32>
    %6 = arith.addf %2, %5 : vector<2x8xf32>
    %c0_8 = arith.constant 0 : index
    %c0_9 = arith.constant 0 : index
    %7 = vector.load %arg4[%c0_8, %c0_9] : memref<1x8xf32, #tpu.memory_space<vmem>>, vector<1x8xf32>
    %8 = vector.broadcast %7 : vector<1x8xf32> to vector<2x8xf32>
    %9 = arith.addf %6, %8 : vector<2x8xf32>
    %cst_10 = arith.constant dense<0xFF800000> : vector<2xf32>
    %10 = vector.multi_reduction <maximumf>, %9, %cst_10 [1] : vector<2x8xf32> to vector<2xf32>
    %11 = vector.shape_cast %10 : vector<2xf32> to vector<2x1xf32>
    %12 = vector.broadcast %11 : vector<2x1xf32> to vector<2x8xf32>
    %13 = arith.subf %9, %12 : vector<2x8xf32>
    %14 = math.exp %13 : vector<2x8xf32>
    %cst_11 = arith.constant dense<0.000000e+00> : vector<2xf32>
    %15 = vector.multi_reduction <add>, %14, %cst_11 [1] : vector<2x8xf32> to vector<2xf32>
    %16 = vector.shape_cast %15 : vector<2xf32> to vector<2x1xf32>
    %17 = tpu.reciprocal %16 {approx = true} : vector<2x1xf32> -> vector<2x1xf32>
    %18 = vector.broadcast %17 : vector<2x1xf32> to vector<2x8xf32>
    %19 = arith.mulf %14, %18 : vector<2x8xf32>
    %c0_12 = arith.constant 0 : index
    %c0_13 = arith.constant 0 : index
    %20 = vector.load %arg5[%c0_12, %c0_13] : memref<2x8xf32, #tpu.memory_space<vmem>>, vector<2x8xf32>
    %21 = arith.mulf %19, %20 : vector<2x8xf32>
    %c0_14 = arith.constant 0 : index
    %c0_15 = arith.constant 0 : index
    %22 = vector.load %arg6[%c0_14, %c0_15] : memref<2x8xf32, #tpu.memory_space<vmem>>, vector<2x8xf32>
    tpu.vector_store %arg6[%c0_14, %c0_15], %21 {strides = array<i32>} : memref<2x8xf32, #tpu.memory_space<vmem>>, vector<2x8xf32>,
    %23 = tpu.iota {dimensions = array<i32: 1>} : vector<2x8xi32>
    %cst_16 = arith.constant dense<0xFF800000> : vector<2xf32>
    %24 = vector.multi_reduction <maximumf>, %21, %cst_16 [1] : vector<2x8xf32> to vector<2xf32>
    %25 = vector.shape_cast %24 : vector<2xf32> to vector<2x1xf32>
    %26 = vector.broadcast %25 : vector<2x1xf32> to vector<2x8xf32>
    %27 = arith.cmpf oeq, %21, %26 : vector<2x8xf32>
    %c8_i32 = arith.constant 8 : i32
    %28 = vector.broadcast %c8_i32 : i32 to vector<2x8xi32>
    %29 = arith.select %27, %23, %28 : vector<2x8xi1>, vector<2x8xi32>
    %cst_17 = arith.constant dense<2147483647> : vector<2xi32>
    %30 = vector.multi_reduction <minsi>, %29, %cst_17 [1] : vector<2x8xi32> to vector<2xi32>
    %31 = vector.shape_cast %30 : vector<2xi32> to vector<2x1xi32>
    %c0_18 = arith.constant 0 : index
    %c0_19 = arith.constant 0 : index
    %32 = vector.load %arg7[%c0_18, %c0_19] : memref<2x1xi32, #tpu.memory_space<vmem>>, vector<2x1xi32>
    tpu.vector_store %arg7[%c0_18, %c0_19], %31 {strides = array<i32>} : memref<2x1xi32, #tpu.memory_space<vmem>>, vector<2x1xi32>,
    return
  }
}

</mosaic_0001>

<bundles_post_ra>
// kernel: zm_dqn_select_action.1
= control target key start
LH: loop header
LB: loop body
LE: loop exit
PB: predicated region body
PF: predicated region fallthrough
CT: control target
= control target key end

     0   :  { %v42_v3 = vlaneseq  ;;  %v465_v6 = vmov 1983009808   ;;  %v466_v12 = vmov 0.0   ;;  %s567_s0 = inlined_call_operand.vmem [shape: f32[2,8], index: 0, kind: input, shape index: {}]   ;;  %s568_s1 = inlined_call_operand.vmem [shape: f32[2,768], index: 1, kind: input, shape index: {}]   ;;  %s569_s2 = inlined_call_operand.vmem [shape: f32[8,8], index: 2, kind: input, shape index: {}]   ;;  %s570_s3 = inlined_call_operand.vmem [shape: f32[8,768], index: 3, kind: input, shape index: {}]   ;;  %s571_s4 = inlined_call_operand.vmem [shape: f32[1,8], index: 4, kind: input, shape index: {}]   ;;  %s572_s5 = inlined_call_operand.vmem [shape: f32[2,8], index: 5, kind: input, shape index: {}]   ;;  %s573_s6 = inlined_call_operand.hbm [shape: f32[2,8], index: 6, kind: output, shape index: {0}]   ;;  %s574_s7 = inlined_call_operand.vmem [shape: s32[2,1], index: 7, kind: output, shape index: {1}]  }
   0x1   :  { %v31_v0 = vld [vmem:[%s570_s3 + $0x8] sm:$0xff]  ;;  %v30_v1 = vld [vmem:[%s570_s3] sm:$0xff]  ;;  %v33_v2 = vld [vmem:[%s570_s3 + $0x18] sm:$0xff]  ;;  %v40_v7 = vunpack.c.l.s4 %v465_v6 }
   0x2   :  { %69 = vmatprep.subr.mxu0 %v31_v0  ;;  %139 = vmatprep.subr.mxu1 %v33_v2  ;;  %v32_v4 = vld [vmem:[%s570_s3 + $0x10] sm:$0xff]  ;;  %v28_v5 = vld [vmem:[%s568_s1] sm:$0xff]  ;;  %v35_v8 = vld [vmem:[%s570_s3 + $0x28] sm:$0xff]  ;;  %v43_v9 = vshrl.u32 %v42_v3, 7 }
   0x3   :  { %70 = vmatpush1.xpose.msra.mxu0 %v30_v1  ;;  %140 = vmatpush1.xpose.msra.mxu1 %v32_v4  ;;  %v41_v10 = vunpack.c.0.s8 %v40_v7  ;;  %v38_v11 = vcombine.high %v28_v5, %v28_v5 }
   0x4   :  { %209 = vmatprep.subr.mxu0 %v35_v8  ;;  %427 = vmatprep.subr.mxu1 %v466_v12 }
   0x5   :  { %13 = vsyncpa [#allocation3], 0  ;;  %v44_v13 = vsub.s32 %v41_v10, %v43_v9  ;;  %v421_v16 = vld.sshfl [vmem:[%s568_s1 + $0x8] sm:$0x33 pattern:$0x76325410] }
   0x6   :  { %v34_v19 = vld [vmem:[%s570_s3 + $0x20] sm:$0xff]  ;;  %vm279_vm0 = vcmask 64512   ;;  %v62_v21 = vcombine.high %v421_v16, %v421_v16  ;;  %vm467_vm1 = vmmov 0   ;;  %vm364_vm2 = vcmask 58368  }
   0x7   :  { %v45_v14 = vrot.slane %v28_v5, %v44_v13  ;;  %v52_v15 = vrot.slane %v38_v11, %v44_v13  ;;  %v27_v20 = vld [vmem:[%s569_s2] sm:$0xff]  ;;  %v380_v48 = vand.u32 127, %v42_v3 }
   0x8   :  { %v26_v22 = vld [vmem:[%s567_s0] sm:$0x3] }
   0x9   :  { %v53_v17 = vcombine.high %v45_v14, %v45_v14  ;;  %v54_v18 = vcombine.high %v52_v15, %v52_v15  ;;  %v424_v33 = vld [vmem:[%s571_s4] ss:$0 sm:$0xff]  ;;  %s468_s4 = smov [#allocation2]  }
   0xa   :  { %v376_v44 = vld [vmem:[%s572_s5] sm:$0x3]  ;;  %s409_s5 = sshll.u32 %s468_s4, 4  ;;  %s410_s5 = int_to_ptr.vmem [resolvable:$true] %s409_s5 }
   0xb   :  { %133 = vmatprep.mubr.f32.mxu0 %v53_v17  ;;  %203 = vmatprep.mubr.f32.mxu1 %v54_v18  ;;  %s441_s21 = scalar_lea.vmem %s410_s5, 32  ;;  %p446_p1 = scmp.lt.s32.totalorder %s410_s5, %s410_s5 }
   0xc   :  { %134 = vmatmul.mubr.f32.vlgmr.msra.gmra.mrb[0].mxu0 %v45_v14  ;;  %204 = vmatmul.mubr.f32.vlgmr.msra.gmra.mrb[0].mxu1 %v52_v15  ;;  %p442_p0 = scmp.ne.s32.totalorder %s410_s5, %s441_s21  ;;  %p447_p2 = scmp.lt.s32.totalorder %s441_s21, %s441_s21 }
   0xd   :  { %210 = vmatpush1.xpose.msra.mxu0 %v34_v19  ;;  %428 = vmatpush3.xpose.msk.msra.mxu1 %vm279_vm0, %v27_v20 }
   0xe   :  { %273 = vmatprep.mubr.f32.mxu0 %v62_v21  ;;  %429 = vmatprep.mubr.msk.f32.mxu1 %vm467_vm1, %v466_v12  ;;  %p448_p3 = por %p447_p2, %p446_p1 }
  0x10   :  { %274 = vmatmul.mubr.f32.vlgmr.msra.gmra.mrb[2].mxu0 %v421_v16  ;;  %430 = vmatmul.mubr.msk.f32.vlgmr.msra.gmra.mrb[2].mxu1 %vm279_vm0, %v26_v22  ;;  %p449_p4 = pnand %p448_p3, %p442_p0 }
  0xdf   :  { %v135_v23 = vpop.f32.mrb[0].mxu0  ;;  %v205_v24 = vpop.f32.mrb[0].mxu1 }
  0xe0   :  { %v206_v25 = vadd.f32 %v205_v24, %v135_v23  ;;  %v137_v26 = vpop.f32.mrb[1].mxu0  ;;  %v207_v27 = vpop.f32.mrb[1].mxu1 }
  0xe3   :  { %v275_v28 = vpop.f32.mrb[2].mxu0  ;;  %v352_v29 = vpop.f32.mrb[2].mxu1 }
  0xe4   :  { %v276_v30 = vadd.f32 %v275_v28, %v206_v25  ;;  %v277_v31 = vpop.f32.mrb[3].mxu0  ;;  %v431_v32 = vpop.f32.mrb[3].mxu1 }
  0xe6   :  { %v353_v34 = vadd.f32 %v352_v29, %v276_v30 }
  0xe8   :  { %v363_v35 = vadd.f32 %v424_v33, %v353_v34 }
  0xea   :  { %v365_v36 = vsel %vm364_vm2, %v363_v35, -inf }
  0xeb   :  { %366 = vmax.xlane.f32.xlu0 %v365_v36 }
 0x178   :  { %v367_v37 = vpop.xlane.xlu0 %366 }
 0x179   :  { %v368_v38 = vsub.f32 %v363_v35, %v367_v37 }
 0x17b   :  { %v369_v39 = vmul.f32 1.442695, %v368_v38 }
 0x17d   :  { %437 = vpow2.f32 %v369_v39 }
 0x187   :  { %v438_v40 = vpop.eup %437 }
 0x188   :  { %v371_v41 = vsel %vm364_vm2, %v438_v40, 0.0 }
 0x189   :  { %372 = vadd.xlane.f32.xlu0 %v371_v41 }
 0x216   :  { %v373_v42 = vpop.xlane.xlu0 %372 }
 0x217   :  { %439 = vrcp.f32 %v373_v42 }
 0x221   :  { %v440_v43 = vpop.eup %439 }
 0x222   :  { %v375_v45 = vmul.f32 %v440_v43, %v438_v40 }
 0x224   :  { %v377_v46 = vmul.f32 %v376_v44, %v375_v45 }
 0x226   :  { %v381_v47 = vsel %vm364_vm2, %v377_v46, -inf  ;;  %378 = vst.msk [vmem:[#allocation2] sm:$0x3] %vm364_vm2, %v377_v46 }
 0x227   :  { %382 = vmax.xlane.f32.xlu1 %v381_v47 }
 0x2b4   :  { %v383_v49 = vpop.xlane.xlu1 %382 }
 0x2b5   :  { %vm384_vm3 = vcmp.eq.f32.partialorder %v377_v46, %v383_v49 }
 0x2b6   :  { %v385_v50 = vsel %vm384_vm3, %v380_v48, 8 }
 0x2b7   :  { %v386_v51 = vsel %vm364_vm2, %v385_v50, 2147483647 }
 0x2b8   :  { %v388_v52 = vshra.s32 %v386_v51, 16  ;;  %v387_v54 = vand.u32 65535, %v386_v51 }
 0x2ba   :  { %v390_v53 = vcvt.s32.f32 %v388_v52  ;;  %v389_v56 = vcvt.s32.f32 %v387_v54 }
 0x2bc   :  { %391 = vmin.xlane.f32.xlu1 %v390_v53 }
 0x349   :  { %v392_v55 = vpop.xlane.xlu1 %391 }
 0x34a   :  { %vm393_vm4 = vcmp.eq.f32.partialorder %v390_v53, %v392_v55 }
 0x34b   :  { %v394_v57 = vsel %vm393_vm4, %v389_v56, inf }
 0x34c   :  { %395 = vmin.xlane.f32.xlu0 %v394_v57 }
 0x34d   :  { %452 = shalt.err (!%p449_p4)
}
 0x34e   :  { %s453_s24 = scalar_lea.hbm %s573_s6, 32 }
 0x34f   :  { %p454_p5 = scmp.ne.s32.totalorder %s573_s6, %s453_s24  ;;  %p457_p6 = scmp.lt.u32.totalorder %s453_s24, %s573_s6 }
 0x351   :  { %p459_p7 = pnand %p457_p6, %p454_p5 }
 0x353   :  { %462 = shalt.err (!%p459_p7)
}
 0x354   :  { %412 = dma.vmem_to_hbm [thread:$0]  %s410_s5, 32, %s573_s6, [#allocation3]   ;;  %v398_v58 = vcvt.f32.s32 %v392_v55  ;;  %vm401_vm5 = vcmask 1024  }
 0x356   :  { %v399_v60 = vshll.u32 %v398_v58, 16 }
 0x3d9   :  { %v396_v59 = vpop.xlane.xlu0 %395 }
 0x3da   :  { %v397_v61 = vcvt.f32.s32 %v396_v59 }
 0x3dc   :  { %v400_v62 = vadd.s32 %v399_v60, %v397_v61 }
 0x3de   :  { %402 = vst.msk [vmem:[%s574_s7] sm:$0x3] %vm401_vm5, %v400_v62 }
 0x3df   :  { %463 = dma.done.wait [#allocation3], 32  }
 0x3e0   :  { %464 = vsyncadd [#allocation3], 4294967264 }
 0x3e1   :  { %420 = vsyncpa [#allocation3], 1 }

</bundles_post_ra>
